<compile_context>
chip_gen: v7x
topology: tpu7x:2x2x1
jax: 0.10.0
libtpu: 0.0.40
codegen_flags: <defaults>
</compile_context>

<pallas_src>
import jax
import jax.numpy as jnp
from jax.experimental import pallas as pl
from jax.experimental.pallas import tpu as pltpu


def _round_up(x, m):
    return (x + m - 1) // m * m


def _linkpred_kernel(xi_ref, xj_ref,
                     w1_ref, b1_ref,
                     w2_ref, b2_ref,
                     w3_ref, b3_ref,
                     o_ref):
    # Hadamard product on the lane-dense (tile_m//pack, 128) block, directly in the
    # compute dtype (bf16 VALU exists on v6e/v7x; use compute_dtype=f32 on v5e).
    x = xi_ref[...] * xj_ref[...]

    # Layers use block-diagonal kron(I_pack, W^T) weights built in the wrapper, so the
    # packed "pack batch rows per sublane-row" layout is preserved end-to-end and the
    # activation never needs an in-kernel transpose/reshape.  All matmuls accumulate f32.
    h = jnp.dot(x, w1_ref[...], preferred_element_type=jnp.float32)
    h = jnp.maximum(h + b1_ref[...], 0.0)
    # TODO(synk): F.dropout with training=True would need pltpu.prng_seed +
    # pltpu.stateful_bernoulli; the module is evaluated in eval mode so dropout == identity.

    h = jnp.dot(h.astype(w2_ref.dtype), w2_ref[...], preferred_element_type=jnp.float32)
    h = jnp.maximum(h + b2_ref[...], 0.0)

    z = jnp.dot(h.astype(w3_ref.dtype), w3_ref[...], preferred_element_type=jnp.float32)
    o_ref[...] = jax.nn.sigmoid(z + b3_ref[...]).astype(o_ref.dtype)


def link_predictor(x_i, x_j, params, *, tile_m=4096, compute_dtype=jnp.float32):
    """LinkPredictor forward (num_layers = 3).

    params = (w1, b1, w2, b2, w3, b3) in torch layout: w_k is [out_features, in_features],
    b_k is [out_features].  compute_dtype=jnp.bfloat16 halves HBM traffic on v6e/v7x;
    keep float32 on v5e (no bf16 VPU there).
    """
    w1, b1, w2, b2, w3, b3 = params
    M, c_in = x_i.shape
    H = w1.shape[0]
    c_out = w3.shape[0]
    assert w1.shape == (H, c_in) and w2.shape == (H, H) and w3.shape == (c_out, H)
    # TODO(synk): the lane-dense packed path assumes c_in divides 128 and c_in >= 8;
    # other channel counts would fall back to a (tile_m, c_in) layout.
    assert 128 % c_in == 0 and c_in >= 8
    pack = 128 // c_in
    assert tile_m % 128 == 0

    # tile_m: large enough to amortise the ~0.35 us fixed per-grid-step cost, but capped
    # so the grid has >= 2 steps whenever the (128-aligned) batch allows it, keeping both
    # v7x TensorCores fed under "parallel" semantics.
    m128 = _round_up(M, 128)
    if m128 >= 256:
        tile_m = min(tile_m, max(128, (m128 // 2) // 128 * 128))
    tile_m = min(tile_m, m128)
    m_pad = _round_up(M, tile_m)
    grid = (m_pad // tile_m,)
    rows = tile_m // pack                     # sublane rows per input tile

    cdt = compute_dtype
    if m_pad != M:
        pad = ((0, m_pad - M), (0, 0))
        x_i = jnp.pad(x_i, pad)               # padded rows -> finite bias-only scores, sliced off
        x_j = jnp.pad(x_j, pad)

    # Lane-dense packing: (m_pad, c_in) -> (m_pad//pack, 128); free row-major view.
    # Lane l = q*c_in + c holds feature c of batch element (pack*r + q).
    xi_p = x_i.astype(cdt).reshape(m_pad // pack, 128)
    xj_p = x_j.astype(cdt).reshape(m_pad // pack, 128)

    # Block-diagonal weights: kron(I_pack, W^T) keeps the pack independent batch slots
    # in a lane-group each multiplying the same W.  Built once at trace time.
    eye = jnp.eye(pack, dtype=jnp.float32)
    w1_bd = jnp.kron(eye, w1.T.astype(jnp.float32)).astype(cdt)       # (128, pack*H)
    w2_bd = jnp.kron(eye, w2.T.astype(jnp.float32)).astype(cdt)       # (pack*H, pack*H)
    w3_bd = jnp.kron(eye, w3.T.astype(jnp.float32)).astype(cdt)       # (pack*H, pack*c_out)
    # Biases stay f32 (accumulation dtype), tiled across the pack lane-groups.
    b1_t = jnp.tile(b1.astype(jnp.float32), pack).reshape(1, pack * H)
    b2_t = jnp.tile(b2.astype(jnp.float32), pack).reshape(1, pack * H)
    b3_t = jnp.tile(b3.astype(jnp.float32), pack).reshape(1, pack * c_out)

    full = lambda shape: pl.BlockSpec(shape, lambda i: (0, 0))
    itemsize = jnp.dtype(cdt).itemsize
    cost = pl.CostEstimate(
        flops=int(2 * m_pad * (c_in * H + H * H + H * c_out) + m_pad * c_in),
        transcendentals=int(m_pad * c_out),
        bytes_accessed=int(2 * m_pad * c_in * itemsize + m_pad * c_out * 4
                           + (w1_bd.size + w2_bd.size + w3_bd.size) * itemsize),
    )

    # VMEM per step (tile_m=4096, f32): inputs 2 x 2buf x (1024,128)x4B = 4 MiB,
    # weights/biases ~0.14 MiB resident, intermediates ~1.5 MiB, output tiny -> ~6 MiB,
    # within every generation's scoped default (v5e 16 MiB), so no vmem_limit override.
    # If DMA issue latency still shows on xprof, bump the two input BlockSpecs to
    # pipeline_mode=pl.Buffered(3) (costs ~2 MiB more at tile_m=4096/f32).
    out = pl.pallas_call(
        _linkpred_kernel,
        out_shape=jax.ShapeDtypeStruct((m_pad // pack, pack * c_out), jnp.float32),
        grid_spec=pltpu.PrefetchScalarGridSpec(
            num_scalar_prefetch=0,
            grid=grid,
            in_specs=[
                pl.BlockSpec((rows, 128), lambda i: (i, 0)),   # x_i packed tile
                pl.BlockSpec((rows, 128), lambda i: (i, 0)),   # x_j packed tile
                full((128, pack * H)),        # w1 block-diag (resident)
                full((1, pack * H)),          # b1
                full((pack * H, pack * H)),   # w2 block-diag
                full((1, pack * H)),          # b2
                full((pack * H, pack * c_out)),  # w3 block-diag
                full((1, pack * c_out)),      # b3
            ],
            out_specs=pl.BlockSpec((rows, pack * c_out), lambda i: (i, 0)),
        ),
        compiler_params=pltpu.CompilerParams(
            dimension_semantics=("parallel",)),
        cost_estimate=cost,
    )(xi_p, xj_p, w1_bd, b1_t, w2_bd, b2_t, w3_bd, b3_t)

    # (m_pad//pack, pack*c_out) row-major == (m_pad, c_out); slice off padded rows.
    return out.reshape(m_pad, c_out)[:M]


def init_linear(key, fan_in, fan_out):
    """torch.nn.Linear default init (uniform +/- 1/sqrt(fan_in)), torch [out, in] layout."""
    kw, kb = jax.random.split(key)
    bound = 1.0 / (fan_in ** 0.5)
    w = jax.random.uniform(kw, (fan_out, fan_in), jnp.float32, -bound, bound)
    b = jax.random.uniform(kb, (fan_out,), jnp.float32, -bound, bound)
    return w, b


def _reference(x_i, x_j, params):
    w1, b1, w2, b2, w3, b3 = params
    dot = lambda a, b: jnp.dot(a, b, precision=jax.lax.Precision.HIGHEST)
    x = x_i * x_j
    h = jnp.maximum(dot(x, w1.T) + b1, 0.0)
    h = jnp.maximum(dot(h, w2.T) + b2, 0.0)
    return jax.nn.sigmoid(dot(h, w3.T) + b3)


if __name__ == "__main__":
    # Small shapes consistent with the module's forward (num_layers = 3).
    in_channels, hidden_channels, out_channels = 32, 32, 1
    batch = 1000   # not a tile multiple -> exercises padding; grid = 2

    key = jax.random.PRNGKey(0)
    k_xi, k_xj, k1, k2, k3 = jax.random.split(key, 5)

    x_i = jax.random.normal(k_xi, (batch, in_channels), jnp.float32)
    x_j = jax.random.normal(k_xj, (batch, in_channels), jnp.float32)

    w1, b1 = init_linear(k1, in_channels, hidden_channels)
    w2, b2 = init_linear(k2, hidden_channels, hidden_channels)
    w3, b3 = init_linear(k3, hidden_channels, out_channels)
    params = (w1, b1, w2, b2, w3, b3)

    ref = _reference(x_i, x_j, params)

    # f32 path (also the v5e-recommended configuration).
    out = jax.block_until_ready(link_predictor(x_i, x_j, params))
    assert out.shape == (batch, out_channels)
    assert jnp.allclose(out, ref, atol=2e-3, rtol=2e-3), float(jnp.max(jnp.abs(out - ref)))

    # bf16 activation/weight path (v6e / v7x HBM-bandwidth optimisation), loose tolerance.
    out_bf16 = jax.block_until_ready(
        link_predictor(x_i, x_j, params, compute_dtype=jnp.bfloat16))
    assert float(jnp.max(jnp.abs(out_bf16 - ref))) < 5e-2

    # Smaller batch -> different tile_m / grid path (tile_m capped to 128, grid = 2).
    out_small = jax.block_until_ready(link_predictor(x_i[:200], x_j[:200], params))
    assert jnp.allclose(out_small, ref[:200], atol=2e-3, rtol=2e-3)

    print("KERNEL_OK")
</pallas_src>

<mosaic_0001>
module attributes {stable_mosaic.version = 11 : i64} {
  func.func @_linkpred_kernel(%arg0: i32, %arg1: memref<128x128xf32, #tpu.memory_space<vmem>>, %arg2: memref<128x128xf32, #tpu.memory_space<vmem>>, %arg3: memref<128x128xf32, #tpu.memory_space<vmem>>, %arg4: memref<1x128xf32, #tpu.memory_space<vmem>>, %arg5: memref<128x128xf32, #tpu.memory_space<vmem>>, %arg6: memref<1x128xf32, #tpu.memory_space<vmem>>, %arg7: memref<128x4xf32, #tpu.memory_space<vmem>>, %arg8: memref<1x4xf32, #tpu.memory_space<vmem>>, %arg9: memref<128x4xf32, #tpu.memory_space<vmem>>) attributes {dimension_semantics = [#tpu.dimension_semantics<parallel>], iteration_bounds = array<i64: 2>, scalar_prefetch = 0 : i64, scratch_operands = 0 : i64, tpu.core_type = #tpu.core_type<tc>, window_params = [{transform_indices = @transform_0, window_bounds = array<i64: 128, 128>}, {transform_indices = @transform_1, window_bounds = array<i64: 128, 128>}, {pipeline_mode = #tpu.pipeline_mode<synchronous>, transform_indices = @transform_2, window_bounds = array<i64: 128, 128>}, {pipeline_mode = #tpu.pipeline_mode<synchronous>, transform_indices = @transform_3, window_bounds = array<i64: 1, 128>}, {pipeline_mode = #tpu.pipeline_mode<synchronous>, transform_indices = @transform_4, window_bounds = array<i64: 128, 128>}, {pipeline_mode = #tpu.pipeline_mode<synchronous>, transform_indices = @transform_5, window_bounds = array<i64: 1, 128>}, {pipeline_mode = #tpu.pipeline_mode<synchronous>, transform_indices = @transform_6, window_bounds = array<i64: 128, 4>}, {pipeline_mode = #tpu.pipeline_mode<synchronous>, transform_indices = @transform_7, window_bounds = array<i64: 1, 4>}, {transform_indices = @transform_8, window_bounds = array<i64: 128, 4>}]} {
    %c0 = arith.constant 0 : index
    %c0_0 = arith.constant 0 : index
    %0 = vector.load %arg1[%c0, %c0_0] : memref<128x128xf32, #tpu.memory_space<vmem>>, vector<128x128xf32>
    %c0_1 = arith.constant 0 : index
    %c0_2 = arith.constant 0 : index
    %1 = vector.load %arg2[%c0_1, %c0_2] : memref<128x128xf32, #tpu.memory_space<vmem>>, vector<128x128xf32>
    %2 = arith.mulf %0, %1 : vector<128x128xf32>
    %c0_3 = arith.constant 0 : index
    %c0_4 = arith.constant 0 : index
    %3 = vector.load %arg3[%c0_3, %c0_4] : memref<128x128xf32, #tpu.memory_space<vmem>>, vector<128x128xf32>
    %cst = arith.constant dense<0.000000e+00> : vector<128x128xf32>
    %4 = tpu.matmul %2, %3, %cst {dimension_numbers = #tpu.dot_dimension_numbers<[1], [0], [0], [1], [0, 0, 1, 1], [], []>} : vector<128x128xf32>, vector<128x128xf32>, vector<128x128xf32> -> vector<128x128xf32>
    %c0_5 = arith.constant 0 : index
    %c0_6 = arith.constant 0 : index
    %5 = vector.load %arg4[%c0_5, %c0_6] : memref<1x128xf32, #tpu.memory_space<vmem>>, vector<1x128xf32>
    %6 = vector.broadcast %5 : vector<1x128xf32> to vector<128x128xf32>
    %7 = arith.addf %4, %6 : vector<128x128xf32>
    %cst_7 = arith.constant 0.000000e+00 : f32
    %8 = vector.broadcast %cst_7 : f32 to vector<128x128xf32>
    %9 = arith.maximumf %7, %8 : vector<128x128xf32>
    %c0_8 = arith.constant 0 : index
    %c0_9 = arith.constant 0 : index
    %10 = vector.load %arg5[%c0_8, %c0_9] : memref<128x128xf32, #tpu.memory_space<vmem>>, vector<128x128xf32>
    %cst_10 = arith.constant dense<0.000000e+00> : vector<128x128xf32>
    %11 = tpu.matmul %9, %10, %cst_10 {dimension_numbers = #tpu.dot_dimension_numbers<[1], [0], [0], [1], [0, 0, 1, 1], [], []>} : vector<128x128xf32>, vector<128x128xf32>, vector<128x128xf32> -> vector<128x128xf32>
    %c0_11 = arith.constant 0 : index
    %c0_12 = arith.constant 0 : index
    %12 = vector.load %arg6[%c0_11, %c0_12] : memref<1x128xf32, #tpu.memory_space<vmem>>, vector<1x128xf32>
    %13 = vector.broadcast %12 : vector<1x128xf32> to vector<128x128xf32>
    %14 = arith.addf %11, %13 : vector<128x128xf32>
    %cst_13 = arith.constant 0.000000e+00 : f32
    %15 = vector.broadcast %cst_13 : f32 to vector<128x128xf32>
    %16 = arith.maximumf %14, %15 : vector<128x128xf32>
    %c0_14 = arith.constant 0 : index
    %c0_15 = arith.constant 0 : index
    %17 = vector.load %arg7[%c0_14, %c0_15] : memref<128x4xf32, #tpu.memory_space<vmem>>, vector<128x4xf32>
    %cst_16 = arith.constant dense<0.000000e+00> : vector<128x4xf32>
    %18 = tpu.matmul %16, %17, %cst_16 {dimension_numbers = #tpu.dot_dimension_numbers<[1], [0], [0], [1], [0, 0, 1, 1], [], []>} : vector<128x128xf32>, vector<128x4xf32>, vector<128x4xf32> -> vector<128x4xf32>
    %c0_17 = arith.constant 0 : index
    %c0_18 = arith.constant 0 : index
    %19 = vector.load %arg8[%c0_17, %c0_18] : memref<1x4xf32, #tpu.memory_space<vmem>>, vector<1x4xf32>
    %20 = vector.broadcast %19 : vector<1x4xf32> to vector<128x4xf32>
    %21 = arith.addf %18, %20 : vector<128x4xf32>
    %22 = arith.negf %21 : vector<128x4xf32>
    %23 = math.exp %22 : vector<128x4xf32>
    %cst_19 = arith.constant 1.000000e+00 : f32
    %24 = vector.broadcast %cst_19 : f32 to vector<128x4xf32>
    %25 = arith.addf %24, %23 : vector<128x4xf32>
    %26 = arith.divf %24, %25 : vector<128x4xf32>
    %c0_20 = arith.constant 0 : index
    %c0_21 = arith.constant 0 : index
    %27 = vector.load %arg9[%c0_20, %c0_21] : memref<128x4xf32, #tpu.memory_space<vmem>>, vector<128x4xf32>
    tpu.vector_store %arg9[%c0_20, %c0_21], %26 {strides = array<i32>} : memref<128x4xf32, #tpu.memory_space<vmem>>, vector<128x4xf32>,
    return
  }
  func.func @transform_0(%arg0: i32) -> (i32, i32) {
    %c0_i32 = arith.constant 0 : i32
    %c0_i32_0 = arith.constant 0 : i32
    return %arg0, %c0_i32 : i32, i32
  }
  func.func @transform_1(%arg0: i32) -> (i32, i32) {
    %c0_i32 = arith.constant 0 : i32
    %c0_i32_0 = arith.constant 0 : i32
    return %arg0, %c0_i32 : i32, i32
  }
  func.func @transform_2(%arg0: i32) -> (i32, i32) {
    %c0_i32 = arith.constant 0 : i32
    %c0_i32_0 = arith.constant 0 : i32
    %c0_i32_1 = arith.constant 0 : i32
    return %c0_i32, %c0_i32_0 : i32, i32
  }
  func.func @transform_3(%arg0: i32) -> (i32, i32) {
    %c0_i32 = arith.constant 0 : i32
    %c0_i32_0 = arith.constant 0 : i32
    %c0_i32_1 = arith.constant 0 : i32
    return %c0_i32, %c0_i32_0 : i32, i32
  }
  func.func @transform_4(%arg0: i32) -> (i32, i32) {
    %c0_i32 = arith.constant 0 : i32
    %c0_i32_0 = arith.constant 0 : i32
    %c0_i32_1 = arith.constant 0 : i32
    return %c0_i32, %c0_i32_0 : i32, i32
  }
  func.func @transform_5(%arg0: i32) -> (i32, i32) {
    %c0_i32 = arith.constant 0 : i32
    %c0_i32_0 = arith.constant 0 : i32
    %c0_i32_1 = arith.constant 0 : i32
    return %c0_i32, %c0_i32_0 : i32, i32
  }
  func.func @transform_6(%arg0: i32) -> (i32, i32) {
    %c0_i32 = arith.constant 0 : i32
    %c0_i32_0 = arith.constant 0 : i32
    %c0_i32_1 = arith.constant 0 : i32
    return %c0_i32, %c0_i32_0 : i32, i32
  }
  func.func @transform_7(%arg0: i32) -> (i32, i32) {
    %c0_i32 = arith.constant 0 : i32
    %c0_i32_0 = arith.constant 0 : i32
    %c0_i32_1 = arith.constant 0 : i32
    return %c0_i32, %c0_i32_0 : i32, i32
  }
  func.func @transform_8(%arg0: i32) -> (i32, i32) {
    %c0_i32 = arith.constant 0 : i32
    %c0_i32_0 = arith.constant 0 : i32
    return %arg0, %c0_i32 : i32, i32
  }
}

</mosaic_0001>

<bundles_post_ra>
// kernel: tpu_custom_call.1
= control target key start
LH: loop header
LB: loop body
LE: loop exit
PB: predicated region body
PF: predicated region fallthrough
CT: control target
= control target key end

     0   :  { %s2325_s0 = inlined_call_operand.hbm [shape: f32[256,128], index: 0, kind: input, shape index: {}]   ;;  %s2326_s1 = inlined_call_operand.hbm [shape: f32[256,128], index: 1, kind: input, shape index: {}]   ;;  %s2327_s2 = inlined_call_operand.vmem [shape: f32[128,128], index: 2, kind: input, shape index: {}]   ;;  %s2328_s3 = inlined_call_operand.vmem [shape: f32[1,128], index: 3, kind: input, shape index: {}]   ;;  %s2329_s4 = inlined_call_operand.hbm [shape: f32[128,128], index: 4, kind: input, shape index: {}]   ;;  %s2330_s5 = inlined_call_operand.vmem [shape: f32[1,128], index: 5, kind: input, shape index: {}]   ;;  %s2331_s6 = inlined_call_operand.vmem [shape: f32[128,4], index: 6, kind: input, shape index: {}]   ;;  %s2332_s7 = inlined_call_operand.vmem [shape: f32[1,4], index: 7, kind: input, shape index: {}]   ;;  %s2333_s8 = inlined_call_operand.vmem [shape: f32[256,4], index: 8, kind: output, shape index: {}]  }
   0x1   :  { %2341 = sst [smem:[#allocation10_spill]] %s2325_s0 }
   0x2   :  { %2342 = sst [smem:[#allocation11_spill]] %s2329_s4 }
   0x3   :  { %13 = vsyncpa [#allocation3], 0 }
   0x4   :  { %15 = vsyncpa [#allocation3 + $0x1], 0 }
   0x5   :  { %16 = vsyncpa [#allocation5], 0 }
   0x6   :  { %18 = vsyncpa [#allocation5 + $0x1], 0  ;;  %s1898_s27 = smov 0   ;;  %s1900_s28 = smov 0  }
   0x7   :  { %s1902_s29 = smov 0   ;;  %s1904_s30 = smov 0  }
   0x8 LB: > { %s1917_s9 = sadd.s32 4294967295, %s1846_s30   ;;  %p44_p0 = scmp.ne.s32.totalorder %s1838_s28, %s1834_s27  ;;  %s1846_s30 = sphi %s1904_s30, %s2358_s30   ;;  %s1842_s29 = sphi %s1902_s29, %s2357_s29   ;;  %s1838_s28 = sphi %s1900_s28, %s2356_s28   ;;  %s1834_s27 = sphi %s1898_s27, %s2355_s27  }
   0x9   : > { %p2334_p1 = scmp.eq.s32.totalorder %s1917_s9, 0  ;;  %p1181_p2 = scmp.ge.s32.totalorder %s1846_s30, 1 }
   0xa   : > { %p233_p3 = scmp.lt.s32.totalorder %s1846_s30, 3  ;;  %s1848_s12 = smov [#allocation6]  }
   0xb   : > { %p1925_p4 = por %p2334_p1, %p44_p0  ;;  %s251_s13 = sshll.u32 %s1848_s12, 4  ;;  %s252_s13 = int_to_ptr.vmem [resolvable:$true] %s251_s13 }
   0xc   : > { %p1929_p5 = pnand %p1181_p2, %p233_p3  ;;  %s1942_s15 = sadd.s32 1, %s1846_s30  }
   0xd   : > { %s2343_s10 = scalar_select %p1925_p4, 1, 0 }
   0xe   : > { %s2344_s11 = scalar_select %p1929_p5, 1, 0 }
   0xf   : > { %p1603_p6 = pneg %p1929_p5  ;;  %s31_s16 = sadd.s32 1, %s1842_s29 }
  0x10   : > { %s28_s17 = ssub.s32 %s1846_s30, %s1942_s15  ;;  %s2346_s4 = sld [smem:[#allocation11_spill]] }
  0x11   : > { %p1937_p7 = pnand %p1603_p6, %p2334_p1 }
  0x13   : > { %p1718_p9 = pneg %p1937_p7 }
  0x16   : > { %s1716_s20 = scalar_lea.hbm %s2346_s4, 2048 }
  0x17   : > { %p1717_p8 = scmp.ne.s32.totalorder %s2346_s4, %s1716_s20  ;;  %p1723_p12 = scmp.lt.u32.totalorder %s1716_s20, %s2346_s4 }
  0x19   : > { %p1719_p10 = pnand %p1718_p9, %p1717_p8 }
  0x1b   : > { %p1720_p11 = pneg %p1719_p10 }
  0x1d   : > { %p1725_p13 = pnand %p1723_p12, %p1720_p11 }
  0x1f   : > { %1728 = shalt.err (!%p1725_p13)
}
  0x20   : > { %s1729_s25 = scalar_lea.vmem %s252_s13, 2048  ;;  %p1737_p6 = scmp.lt.s32.totalorder %s252_s13, %s252_s13 }
  0x21   : > { %p1730_p0 = scmp.ne.s32.totalorder %s252_s13, %s1729_s25  ;;  %p1738_p1 = scmp.lt.s32.totalorder %s1729_s25, %s1729_s25 }
  0x23   : > { %p1732_p2 = pnand %p1730_p0, %p1718_p9  ;;  %p1739_p4 = por %p1738_p1, %p1737_p6 }
  0x25   : > { %p1733_p3 = pneg %p1732_p2 }
  0x27   : > { %p1740_p5 = pnand %p1739_p4, %p1733_p3 }
  0x29   : > { %1743 = shalt.err (!%p1740_p5)
}
  0x2a   : > { %s2337_s26 = smov 128   ;;  %s2339_s27 = smov 8  }
  0x2b   : > { %1606 = dma.hbm_to_vmem [thread:$0]  (!%p1937_p7), %s2346_s4, 2048, %s252_s13, [#allocation5], %s2337_s26, %s2337_s26, %s2339_s27  }
  0x2c   : > { %p29_p1 = scmp.eq.s32.totalorder %s28_s17, 0  ;;  %p38_p4 = scmp.ne.s32.totalorder %s1842_s29, %s1838_s28 }
  0x2d   : > { %p39_p5 = scmp.eq.s32.totalorder %s1846_s30, 0  ;;  %p1615_p8 = scmp.lt.s32.totalorder %s1846_s30, 2 }
  0x2e   : > { %s1971_s19 = scalar_select %p29_p1, %s1842_s29, %s31_s16  }
  0x2f   : > { %p40_p9 = por %p39_p5, %p38_p4  ;;  %s274_s20 = sand.u32 1, %s1842_s29  }
  0x30   : > { %s1184_s21 = sshll.u32 %s274_s20, 7  ;;  %s1217_s22 = sshll.u32 %s1846_s30, 11 }
  0x31   : > { %s2347_s0 = sld [smem:[#allocation10_spill]]  ;;  %s278_s25 = scalar_lea.vmem [#allocation2], %s1184_s21 }
  0x32   : > { %s285_s13 = sshll.u32 %s278_s25, 4  ;;  %p1982_p7 = pnand %p1615_p8, %p40_p9  ;;  %s1980_s13 = int_to_ptr.vmem [resolvable:$true] %s285_s13 }
  0x33   : > { %s1989_s18 = scalar_lea.hbm %s2326_s1, %s1217_s22  ;;  %s299_s23 = scalar_lea.vmem [#allocation4], %s1184_s21 }
  0x34   : > { %s1991_s24 = sshll.u32 %s299_s23, 4  ;;  %s1993_s26 = scalar_lea.sflag [#allocation3], %s274_s20  ;;  %s2025_s24 = int_to_ptr.vmem [resolvable:$true] %s1991_s24 }
  0x35   : > { %p1746_p11 = pneg %p1982_p7 }
  0x37   : > { %s1978_s14 = scalar_lea.hbm %s2347_s0, %s1217_s22  ;;  %s1749_s17 = scalar_lea.hbm %s2347_s0, 4096 }
  0x38   : > { %s1744_s25 = scalar_lea.hbm %s1978_s14, 2048  ;;  %p1750_p0 = scmp.lt.u32.totalorder %s1978_s14, %s2347_s0 }
  0x39   : > { %p1745_p10 = scmp.ne.s32.totalorder %s1978_s14, %s1744_s25  ;;  %p1751_p2 = scmp.lt.u32.totalorder %s1749_s17, %s1744_s25 }
  0x3a   : > { %p1753_p6 = scmp.lt.u32.totalorder %s1744_s25, %s1978_s14 }
  0x3b   : > { %p1747_p12 = pnand %p1746_p11, %p1745_p10  ;;  %p1752_p3 = por %p1751_p2, %p1750_p0 }
  0x3d   : > { %p1748_p13 = pneg %p1747_p12  ;;  %p1754_p1 = por %p1753_p6, %p1752_p3 }
  0x3f   : > { %p1755_p4 = pnand %p1754_p1, %p1748_p13 }
  0x41   : > { %1758 = shalt.err (!%p1755_p4)
}
  0x42   : > { %s1759_s20 = scalar_lea.vmem %s1980_s13, 2048  ;;  %s1851_s4 = smov [#allocation2]  }
  0x43   : > { %p1760_p5 = scmp.ne.s32.totalorder %s1980_s13, %s1759_s20  ;;  %s1764_s27 = sshll.u32 %s1851_s4, 4  ;;  %s1765_s27 = int_to_ptr.vmem [resolvable:$false] %s1764_s27 }
  0x44   : > { %s1766_s21 = scalar_lea.vmem %s1765_s27, 4096  ;;  %p1767_p10 = scmp.lt.s32.totalorder %s1980_s13, %s1765_s27 }
  0x45   : > { %p1762_p8 = pnand %p1760_p5, %p1746_p11  ;;  %p1768_p12 = scmp.lt.s32.totalorder %s1766_s21, %s1759_s20 }
  0x47   : > { %p1763_p9 = pneg %p1762_p8  ;;  %p1769_p0 = por %p1768_p12, %p1767_p10 }
  0x49   : > { %p1770_p2 = pnand %p1769_p0, %p1763_p9 }
  0x4b   : > { %1773 = shalt.err (!%p1770_p2)
}
  0x4c   : > { %s2349_s23 = smov 8   ;;  %s2350_s25 = smov 128  }
  0x4d   : > { %1610 = dma.hbm_to_vmem [thread:$0]  (!%p1982_p7), %s1978_s14, 2048, %s1980_s13, %s1993_s26, %s2350_s25, %s2350_s25, %s2349_s23  }
  0x4e   : > { %s295_s17 = sand.u32 1, %s1846_s30   ;;  %s1774_s22 = scalar_lea.hbm %s1989_s18, 2048 }
  0x4f   : > { %s2028_s12 = scalar_lea.sflag [#allocation5], %s295_s17  ;;  %p1775_p13 = scmp.ne.s32.totalorder %s1989_s18, %s1774_s22 }
  0x50   : > { %s1779_s27 = scalar_lea.hbm %s2326_s1, 4096  ;;  %p1780_p1 = scmp.lt.u32.totalorder %s1989_s18, %s2326_s1 }
  0x51   : > { %p1777_p3 = pnand %p1775_p13, %p1746_p11  ;;  %p1781_p4 = scmp.lt.u32.totalorder %s1779_s27, %s1774_s22 }
  0x52   : > { %p1783_p8 = scmp.lt.u32.totalorder %s1774_s22, %s1989_s18 }
  0x53   : > { %p1778_p6 = pneg %p1777_p3  ;;  %p1782_p5 = por %p1781_p4, %p1780_p1 }
  0x55   : > { %p1784_p9 = por %p1783_p8, %p1782_p5 }
  0x57   : > { %p1785_p10 = pnand %p1784_p9, %p1778_p6 }
  0x59   : > { %1788 = shalt.err (!%p1785_p10)
}
  0x5a   : > { %s1789_s30 = scalar_lea.vmem %s2025_s24, 2048  ;;  %s1852_s26 = smov [#allocation4]  }
  0x5b   : > { %p1790_p12 = scmp.ne.s32.totalorder %s2025_s24, %s1789_s30  ;;  %s1794_s14 = sshll.u32 %s1852_s26, 4  ;;  %s1795_s14 = int_to_ptr.vmem [resolvable:$false] %s1794_s14 }
  0x5c   : > { %s1796_s0 = scalar_lea.vmem %s1795_s14, 4096  ;;  %p1797_p13 = scmp.lt.s32.totalorder %s2025_s24, %s1795_s14 }
  0x5d   : > { %p1792_p0 = pnand %p1790_p12, %p1746_p11  ;;  %p1798_p3 = scmp.lt.s32.totalorder %s1796_s0, %s1789_s30 }
  0x5f   : > { %p1793_p2 = pneg %p1792_p0  ;;  %p1799_p1 = por %p1798_p3, %p1797_p13 }
  0x61   : > { %p1800_p4 = pnand %p1799_p1, %p1793_p2 }
  0x63   : > { %1803 = shalt.err (!%p1800_p4)
}
  0x64   : > { %1613 = dma.hbm_to_vmem [thread:$0]  (!%p1982_p7), %s1989_s18, 2048, %s2025_s24, %s2028_s12, %s2350_s25, %s2350_s25, %s2349_s23  }
  0x65   : > { %p2351_p11 = scmp.ne.s32.totalorder %s2344_s11, 0 }
  0x66   : > { %s320_s13 = sand.u32 (!%p2351_p11), 1, %s1838_s28   ;;  %p2352_p6 = scmp.ne.s32.totalorder (!%p2351_p11), %s2343_s10, 0 }
  0x67   : > { %318 = sbr.rel (%p2351_p11) target bundleno = 860 (0x35c), region = 52  ;;  %s1191_s17 = sshll.u32 (!%p2351_p11), %s320_s13, 7 }
  0x68   : > { %s321_s22 = scalar_lea.sflag (!%p2351_p11), [#allocation3], %s320_s13  ;;  %s2060_s20 = scalar_lea.vmem (!%p2351_p11), [#allocation2], %s1191_s17 }
  0x6e   : > { %1821 = dma.done.wait (%p2352_p6), %s321_s22, 2048  }
  0x6f   : > { %1823 = vsyncadd (%p2352_p6), %s321_s22, 4294965248  ;;  %s329_s16 = sand.u32 1, %s1917_s9   ;;  %s2067_s18 = scalar_lea.vmem [#allocation4], %s1191_s17 }
  0x70   : > { %s330_s4 = scalar_lea.sflag [#allocation5], %s329_s16 }
  0x71   : > { %1825 = dma.done.wait (%p2352_p6), %s330_s4, 2048  }
  0x72   : > { %1827 = vsyncadd (%p2352_p6), %s330_s4, 4294965248  ;;  %p2353_p7 = scmp.eq.s32.totalorder %s1917_s9, 0 }
  0x74   : > { %1829 = dma.done.wait (%p2353_p7), [#allocation5], 2048   ;;  %p2354_p5 = pmov %p2353_p7 }
  0x75   : > { %v431_v0 = vld [vmem:[%s2327_s2] sm:$0xff]  ;;  %v432_v1 = vld [vmem:[%s2327_s2 + $0x8] sm:$0xff]  ;;  %v433_v2 = vld [vmem:[%s2327_s2 + $0x10] sm:$0xff]  ;;  %s1194_s16 = sshll.u32 %s1917_s9, 4  ;;  %vm1063_vm0 = vcmask 31744  }
  0x76   : > { %1831 = vsyncadd (%p2354_p5), [#allocation5], 4294965248  ;;  %v1483_v3 = vpack.c.bf16 %v432_v1, %v431_v0  ;;  %v434_v4 = vld [vmem:[%s2327_s2 + $0x18] sm:$0xff]  ;;  %v435_v6 = vld [vmem:[%s2327_s2 + $0x20] sm:$0xff]  ;;  %p378_p8 = scmp.lt.s32.totalorder %s1194_s16, 31 }
  0x77   : > { %v1487_v5 = vpack.c.bf16 %v434_v4, %v433_v2  ;;  %v436_v7 = vld [vmem:[%s2327_s2 + $0x28] sm:$0xff]  ;;  %v383_v9 = vld [vmem:[%s2060_s20] sm:$0xff]  ;;  %v437_v11 = vld [vmem:[%s2327_s2 + $0x30] sm:$0xff] }
  0x78   : > { %1484 = vmatprep.subr.bf16.mxu0 %v1483_v3  ;;  %v1491_v8 = vpack.c.bf16 %v436_v7, %v435_v6  ;;  %v399_v10 = vld [vmem:[%s2067_s18] sm:$0xff]  ;;  %v438_v12 = vld [vmem:[%s2327_s2 + $0x38] sm:$0xff]  ;;  %v440_v16 = vld [vmem:[%s2327_s2 + $0x48] sm:$0xff]  ;;  %s2360_s16 = smov (!%p378_p8, %s1194_s16), 31 }
  0x79   : > { %1486 = vmatpush3.bf16.msra.mxu0 %v1483_v3  ;;  %v415_v13 = vmul.f32 %v399_v10, %v383_v9  ;;  %v1495_v14 = vpack.c.bf16 %v438_v12, %v437_v11  ;;  %v439_v15 = vld [vmem:[%s2327_s2 + $0x40] sm:$0xff]  ;;  %v441_v18 = vld [vmem:[%s2327_s2 + $0x50] sm:$0xff]  ;;  %v442_v19 = vld [vmem:[%s2327_s2 + $0x58] sm:$0xff]  ;;  %s1195_s9 = sshll.u32 %s2360_s16, 3 }
  0x7a   : > { %1488 = vmatprep.subr.bf16.mxu0 %v1487_v5  ;;  %v1499_v17 = vpack.c.bf16 %v440_v16, %v439_v15  ;;  %v615_v20 = vld [vmem:[#allocation6] sm:$0xff]  ;;  %v616_v21 = vld [vmem:[#allocation6 + $0x8] sm:$0xff]  ;;  %v617_v22 = vld [vmem:[#allocation6 + $0x10] sm:$0xff]  ;;  %v1503_v23 = vpack.c.bf16 %v442_v19, %v441_v18  ;;  %s2275_s24 = scalar_lea.vmem %s2333_s8, %s1195_s9 }
  0x7b   : > { %1347 = vmatprep.mubr.f32.mxu0 %v415_v13  ;;  %v443_v24 = vld [vmem:[%s2327_s2 + $0x60] sm:$0xff]  ;;  %v1515_v25 = vpack.c.bf16 %v616_v21, %v615_v20  ;;  %v618_v26 = vld [vmem:[#allocation6 + $0x18] sm:$0xff]  ;;  %v444_v27 = vld [vmem:[%s2327_s2 + $0x68] sm:$0xff] }
  0x7c   : > { %v1519_v28 = vpack.c.bf16 %v618_v26, %v617_v22  ;;  %v619_v29 = vld [vmem:[#allocation6 + $0x20] sm:$0xff]  ;;  %v620_v30 = vld [vmem:[#allocation6 + $0x28] sm:$0xff]  ;;  %v1507_v31 = vpack.c.bf16 %v444_v27, %v443_v24  ;;  %v445_v32 = vld [vmem:[%s2327_s2 + $0x70] sm:$0xff] }
  0x7d   : > { %1490 = vmatpush3.bf16.msra.mxu0 %v1487_v5  ;;  %1516 = vmatprep.subr.bf16.mxu1 %v1515_v25  ;;  %v1523_v33 = vpack.c.bf16 %v620_v30, %v619_v29  ;;  %v446_v34 = vld [vmem:[%s2327_s2 + $0x78] sm:$0xff]  ;;  %v621_v35 = vld [vmem:[#allocation6 + $0x30] sm:$0xff]  ;;  %v623_v39 = vld [vmem:[#allocation6 + $0x40] sm:$0xff] }
  0x7e   : > { %1492 = vmatprep.subr.bf16.mxu0 %v1491_v8  ;;  %1518 = vmatpush3.bf16.msra.mxu1 %v1515_v25  ;;  %v622_v36 = vld [vmem:[#allocation6 + $0x38] sm:$0xff]  ;;  %v1511_v37 = vpack.c.bf16 %v446_v34, %v445_v32  ;;  %v624_v40 = vld [vmem:[#allocation6 + $0x48] sm:$0xff]  ;;  %v385_v43 = vld [vmem:[%s2060_s20 + $0x10] sm:$0xff] }
  0x7f   : > { %1520 = vmatprep.subr.bf16.mxu1 %v1519_v28  ;;  %v1527_v38 = vpack.c.bf16 %v622_v36, %v621_v35  ;;  %v384_v41 = vld [vmem:[%s2060_s20 + $0x8] sm:$0xff]  ;;  %v401_v44 = vld [vmem:[%s2067_s18 + $0x10] sm:$0xff]  ;;  %v1531_v45 = vpack.c.bf16 %v624_v40, %v623_v39  ;;  %v626_v47 = vld [vmem:[#allocation6 + $0x58] sm:$0xff] }
  0x80   : > { %v400_v42 = vld [vmem:[%s2067_s18 + $0x8] sm:$0xff]  ;;  %v625_v46 = vld [vmem:[#allocation6 + $0x50] sm:$0xff]  ;;  %v417_v49 = vmul.f32 %v401_v44, %v385_v43  ;;  %v386_v50 = vld [vmem:[%s2060_s20 + $0x18] sm:$0xff] }
  0x81   : > { %1494 = vmatpush3.bf16.msra.mxu0 %v1491_v8  ;;  %v416_v48 = vmul.f32 %v400_v42, %v384_v41  ;;  %v402_v51 = vld [vmem:[%s2067_s18 + $0x18] sm:$0xff]  ;;  %v387_v52 = vld [vmem:[%s2060_s20 + $0x20] sm:$0xff]  ;;  %v1535_v54 = vpack.c.bf16 %v626_v47, %v625_v46  ;;  %v628_v56 = vld [vmem:[#allocation6 + $0x68] sm:$0xff] }
  0x82   : > { %1496 = vmatprep.subr.bf16.mxu0 %v1495_v14  ;;  %1522 = vmatpush3.bf16.msra.mxu1 %v1519_v28  ;;  %v403_v53 = vld [vmem:[%s2067_s18 + $0x20] sm:$0xff]  ;;  %v418_v57 = vmul.f32 %v402_v51, %v386_v50  ;;  %v388_v59 = vld [vmem:[%s2060_s20 + $0x28] sm:$0xff]  ;;  %v389_v61 = vld [vmem:[%s2060_s20 + $0x30] sm:$0xff] }
  0x83   : > { %1524 = vmatprep.subr.bf16.mxu1 %v1523_v33  ;;  %v627_v55 = vld [vmem:[#allocation6 + $0x60] sm:$0xff]  ;;  %v419_v58 = vmul.f32 %v403_v53, %v387_v52  ;;  %v404_v60 = vld [vmem:[%s2067_s18 + $0x28] sm:$0xff]  ;;  %v405_v62 = vld [vmem:[%s2067_s18 + $0x30] sm:$0xff] }
  0x84   : > { %v1539_v63 = vpack.c.bf16 %v628_v56, %v627_v55  ;;  %v420_v0 = vmul.f32 %v404_v60, %v388_v59  ;;  %v421_v1 = vmul.f32 %v405_v62, %v389_v61  ;;  %v390_v2 = vld [vmem:[%s2060_s20 + $0x38] sm:$0xff]  ;;  %v391_v4 = vld [vmem:[%s2060_s20 + $0x40] sm:$0xff]  ;;  %v392_v8 = vld [vmem:[%s2060_s20 + $0x48] sm:$0xff] }
  0x85   : > { %1498 = vmatpush3.bf16.msra.mxu0 %v1495_v14  ;;  %v406_v3 = vld [vmem:[%s2067_s18 + $0x38] sm:$0xff]  ;;  %v407_v5 = vld [vmem:[%s2067_s18 + $0x40] sm:$0xff]  ;;  %v408_v9 = vld [vmem:[%s2067_s18 + $0x48] sm:$0xff] }
  0x86   : > { %1500 = vmatprep.subr.bf16.mxu0 %v1499_v17  ;;  %1526 = vmatpush3.bf16.msra.mxu1 %v1523_v33  ;;  %v422_v6 = vmul.f32 %v406_v3, %v390_v2  ;;  %v423_v7 = vmul.f32 %v407_v5, %v391_v4  ;;  %v393_v10 = vld [vmem:[%s2060_s20 + $0x50] sm:$0xff]  ;;  %v424_v12 = vmul.f32 %v408_v9, %v392_v8  ;;  %v394_v14 = vld [vmem:[%s2060_s20 + $0x58] sm:$0xff]  ;;  %v395_v16 = vld [vmem:[%s2060_s20 + $0x60] sm:$0xff] }
  0x87   : > { %1528 = vmatprep.subr.bf16.mxu1 %v1527_v38  ;;  %v409_v11 = vld [vmem:[%s2067_s18 + $0x50] sm:$0xff]  ;;  %v410_v15 = vld [vmem:[%s2067_s18 + $0x58] sm:$0xff]  ;;  %v396_v20 = vld [vmem:[%s2060_s20 + $0x68] sm:$0xff] }
  0x88   : > { %v425_v13 = vmul.f32 %v409_v11, %v393_v10  ;;  %v426_v18 = vmul.f32 %v410_v15, %v394_v14  ;;  %v412_v21 = vld [vmem:[%s2067_s18 + $0x68] sm:$0xff]  ;;  %v397_v22 = vld [vmem:[%s2060_s20 + $0x70] sm:$0xff]  ;;  %v398_v26 = vld [vmem:[%s2060_s20 + $0x78] sm:$0xff] }
  0x89   : > { %1502 = vmatpush3.bf16.msra.mxu0 %v1499_v17  ;;  %v411_v17 = vld [vmem:[%s2067_s18 + $0x60] sm:$0xff]  ;;  %v428_v24 = vmul.f32 %v412_v21, %v396_v20  ;;  %v414_v27 = vld [vmem:[%s2067_s18 + $0x78] sm:$0xff]  ;;  %v629_v29 = vld [vmem:[#allocation6 + $0x70] sm:$0xff] }
  0x8a   : > { %1504 = vmatprep.subr.bf16.mxu0 %v1503_v23  ;;  %1530 = vmatpush3.bf16.msra.mxu1 %v1527_v38  ;;  %v427_v19 = vmul.f32 %v411_v17, %v395_v16  ;;  %v430_v28 = vmul.f32 %v414_v27, %v398_v26  ;;  %v630_v30 = vld [vmem:[#allocation6 + $0x78] sm:$0xff]  ;;  %v799_v32 = vld [vmem:[%s2331_s6] sm:$0xff]  ;;  %v800_v33 = vld [vmem:[%s2331_s6 + $0x8] sm:$0xff] }
  0x8b   : > { %1532 = vmatprep.subr.bf16.mxu1 %v1531_v45  ;;  %v801_v34 = vld [vmem:[%s2331_s6 + $0x10] sm:$0xff]  ;;  %v1547_v35 = vpack.c.bf16 %v800_v33, %v799_v32  ;;  %v802_v36 = vld [vmem:[%s2331_s6 + $0x18] sm:$0xff]  ;;  %v803_v38 = vld [vmem:[%s2331_s6 + $0x20] sm:$0xff] }
  0x8c   : > { %v804_v39 = vld [vmem:[%s2331_s6 + $0x28] sm:$0xff]  ;;  %v805_v41 = vld [vmem:[%s2331_s6 + $0x30] sm:$0xff]  ;;  %v806_v42 = vld [vmem:[%s2331_s6 + $0x38] sm:$0xff] }
  0x8d   : > { %1506 = vmatpush3.bf16.msra.mxu0 %v1503_v23  ;;  %v413_v23 = vld [vmem:[%s2067_s18 + $0x70] sm:$0xff]  ;;  %v1555_v40 = vpack.c.bf16 %v804_v39, %v803_v38  ;;  %v2181_v43 = vpack.c.bf16 %v806_v42, %v805_v41  ;;  %v807_v44 = vld [vmem:[%s2331_s6 + $0x40] sm:$0xff]  ;;  %v812_v51 = vld [vmem:[%s2331_s6 + $0x68] sm:$0xff] }
  0x8e   : > { %1508 = vmatprep.subr.bf16.mxu0 %v1507_v31  ;;  %1534 = vmatpush3.bf16.msra.mxu1 %v1531_v45  ;;  %v429_v25 = vmul.f32 %v413_v23, %v397_v22  ;;  %v808_v45 = vld [vmem:[%s2331_s6 + $0x48] sm:$0xff]  ;;  %v809_v47 = vld [vmem:[%s2331_s6 + $0x50] sm:$0xff]  ;;  %v811_v50 = vld [vmem:[%s2331_s6 + $0x60] sm:$0xff] }
  0x8f   : > { %1536 = vmatprep.subr.bf16.mxu1 %v1535_v54  ;;  %v2190_v46 = vpack.c.bf16 %v808_v45, %v807_v44  ;;  %v2210_v52 = vpack.c.bf16 %v812_v51, %v811_v50  ;;  %v2218_v53 = vld [vmem:[%s2328_s3] ss:$0 sm:$0xff]  ;;  %v813_v38 = vld [vmem:[%s2331_s6 + $0x70] sm:$0xff]  ;;  %v814_v39 = vld [vmem:[%s2331_s6 + $0x78] sm:$0xff] }
  0x90   : > { %v1197_v41 = vld [vmem:[%s2330_s5] ss:$0 sm:$0xff] }
  0x91   : > { %1510 = vmatpush3.bf16.msra.mxu0 %v1507_v31  ;;  %v1543_v31 = vpack.c.bf16 %v630_v30, %v629_v29 }
  0x92   : > { %1512 = vmatprep.subr.bf16.mxu0 %v1511_v37  ;;  %1538 = vmatpush3.bf16.msra.mxu1 %v1535_v54 }
  0x93   : > { %1540 = vmatprep.subr.bf16.mxu1 %v1539_v63 }
  0x95   : > { %1514 = vmatpush3.bf16.msra.mxu0 %v1511_v37  ;;  %v1551_v37 = vpack.c.bf16 %v802_v36, %v801_v34 }
  0x96   : > { %1542 = vmatpush3.bf16.msra.mxu1 %v1539_v63  ;;  %1548 = vmatprep.subr.bf16.mxu0 %v1547_v35 }
  0x97   : > { %1544 = vmatprep.subr.bf16.mxu1 %v1543_v31 }
  0x98   : > { %1348 = vmatmul.mubr.f32.vlgmr.msra.gmra.mrb[0].mxu0 %v416_v48  ;;  %v810_v48 = vld [vmem:[%s2331_s6 + $0x58] sm:$0xff] }
  0x99   : > { %1350 = vmatprep.mubr.f32.mxu0 %v417_v49  ;;  %1550 = vmatpush3.bf16.msra.mxu0 %v1547_v35  ;;  %v2200_v49 = vpack.c.bf16 %v810_v48, %v809_v47 }
  0x9a   : > { %1546 = vmatpush3.bf16.msra.mxu1 %v1543_v31  ;;  %1552 = vmatprep.subr.bf16.mxu0 %v1551_v37 }
  0x9b   : > { %1579 = vmatprep.subr.bf16.mxu1 %v1547_v35 }
  0x9c   : > { %1351 = vmatmul.mubr.f32.gmra.mrb[2].mxu0 %v418_v57 }
  0x9d   : > { %1353 = vmatprep.mubr.f32.mxu0 %v419_v58  ;;  %1554 = vmatpush3.bf16.msra.mxu0 %v1551_v37 }
  0x9e   : > { %1556 = vmatprep.subr.bf16.mxu0 %v1555_v40 }
  0xa0   : > { %1354 = vmatmul.mubr.f32.gmra.mrb[4].mxu0 %v420_v0 }
  0xa1   : > { %1356 = vmatprep.mubr.f32.mxu0 %v421_v1  ;;  %1558 = vmatpush3.bf16.msra.mxu0 %v1555_v40 }
  0xa2   : > { %1560 = vmatprep.subr.bf16.mxu0 %v2181_v43 }
  0xa4   : > { %1357 = vmatmul.mubr.f32.gmra.mrb[6].mxu0 %v422_v6 }
  0xa5   : > { %1359 = vmatprep.mubr.f32.mxu0 %v423_v7  ;;  %1562 = vmatpush3.bf16.msra.mxu0 %v2181_v43 }
  0xa6   : > { %1564 = vmatprep.subr.bf16.mxu0 %v2190_v46 }
  0xa8   : > { %1360 = vmatmul.mubr.f32.gmra.mrb[8].mxu0 %v424_v12 }
  0xa9   : > { %1362 = vmatprep.mubr.f32.mxu0 %v425_v13  ;;  %1566 = vmatpush3.bf16.msra.mxu0 %v2190_v46 }
  0xaa   : > { %1568 = vmatprep.subr.bf16.mxu0 %v2200_v49 }
  0xac   : > { %1363 = vmatmul.mubr.f32.gmra.mrb[10].mxu0 %v426_v18 }
  0xad   : > { %1365 = vmatprep.mubr.f32.mxu0 %v427_v19  ;;  %1570 = vmatpush3.bf16.msra.mxu0 %v2200_v49 }
  0xae   : > { %1572 = vmatprep.subr.bf16.mxu0 %v2210_v52 }
  0xb0   : > { %1366 = vmatmul.mubr.f32.gmra.mrb[12].mxu0 %v428_v24 }
  0xb1   : > { %1368 = vmatprep.mubr.f32.mxu0 %v429_v25  ;;  %1574 = vmatpush3.bf16.msra.mxu0 %v2210_v52 }
  0xb4   : > { %1369 = vmatmul.mubr.f32.gmra.mrb[14].mxu0 %v430_v28 }
 0x16b   : > { %v1349_v54 = vpop.f32.mrb[0].mxu0 }
 0x16c   : > { %v526_v55 = vadd.f32 %v1349_v54, %v2218_v53  ;;  %v520_v56 = vpop.f32.mrb[1].mxu0 }
 0x16d   : > { %v521_v57 = vadd.f32 %v2218_v53, %v520_v56 }
 0x16e   : > { %v600_v60 = vmax.f32 %v526_v55, 0.0 }
 0x16f   : > { %v1352_v58 = vpop.f32.mrb[2].mxu0  ;;  %v599_v59 = vmax.f32 %v521_v57, 0.0 }
 0x170   : > { %v536_v61 = vadd.f32 %v1352_v58, %v2218_v53  ;;  %v530_v62 = vpop.f32.mrb[3].mxu0 }
 0x171   : > { %v531_v63 = vadd.f32 %v2218_v53, %v530_v62  ;;  %1403 = vmatprep.mubr.f32.mxu1 %v599_v59 }
 0x172   : > { %1404 = vmatmul.mubr.f32.vlgmr.msra.gmra.mrb[0].mxu1 %v600_v60  ;;  %v602_v2 = vmax.f32 %v536_v61, 0.0 }
 0x173   : > { %v601_v0 = vmax.f32 %v531_v63, 0.0  ;;  %v1355_v1 = vpop.f32.mrb[4].mxu0  ;;  %1587 = vmatpush3.bf16.msra.mxu1 %v1547_v35 }
 0x174   : > { %v546_v3 = vadd.f32 %v1355_v1, %v2218_v53  ;;  %v540_v4 = vpop.f32.mrb[5].mxu0  ;;  %1580 = vmatprep.subr.bf16.mxu1 %v1551_v37 }
 0x175   : > { %v541_v5 = vadd.f32 %v2218_v53, %v540_v4  ;;  %1406 = vmatprep.mubr.f32.mxu1 %v601_v0 }
 0x176   : > { %1407 = vmatmul.mubr.f32.gmra.mrb[2].mxu1 %v602_v2  ;;  %v604_v8 = vmax.f32 %v546_v3, 0.0 }
 0x177   : > { %v603_v6 = vmax.f32 %v541_v5, 0.0  ;;  %v1358_v7 = vpop.f32.mrb[6].mxu0  ;;  %1588 = vmatpush3.bf16.msra.mxu1 %v1551_v37 }
 0x178   : > { %v556_v9 = vadd.f32 %v1358_v7, %v2218_v53  ;;  %v550_v10 = vpop.f32.mrb[7].mxu0  ;;  %1581 = vmatprep.subr.bf16.mxu1 %v1555_v40 }
 0x179   : > { %v551_v11 = vadd.f32 %v2218_v53, %v550_v10  ;;  %1409 = vmatprep.mubr.f32.mxu1 %v603_v6 }
 0x17a   : > { %1410 = vmatmul.mubr.f32.gmra.mrb[4].mxu1 %v604_v8  ;;  %v606_v14 = vmax.f32 %v556_v9, 0.0 }
 0x17b   : > { %v605_v12 = vmax.f32 %v551_v11, 0.0  ;;  %v1361_v13 = vpop.f32.mrb[8].mxu0  ;;  %1589 = vmatpush3.bf16.msra.mxu1 %v1555_v40  ;;  %v1575_v40 = vpack.c.bf16 %v814_v39, %v813_v38 }
 0x17c   : > { %v566_v15 = vadd.f32 %v1361_v13, %v2218_v53  ;;  %v560_v16 = vpop.f32.mrb[9].mxu0  ;;  %1582 = vmatprep.subr.bf16.mxu1 %v2181_v43 }
 0x17d   : > { %v561_v17 = vadd.f32 %v2218_v53, %v560_v16  ;;  %1412 = vmatprep.mubr.f32.mxu1 %v605_v12  ;;  %1576 = vmatprep.subr.bf16.mxu0 %v1575_v40 }
 0x17e   : > { %1413 = vmatmul.mubr.f32.gmra.mrb[6].mxu1 %v606_v14  ;;  %v608_v20 = vmax.f32 %v566_v15, 0.0  ;;  %1578 = vmatpush3.bf16.msra.mxu0 %v1575_v40 }
 0x17f   : > { %v607_v18 = vmax.f32 %v561_v17, 0.0  ;;  %v1364_v19 = vpop.f32.mrb[10].mxu0  ;;  %1590 = vmatpush3.bf16.msra.mxu1 %v2181_v43 }
 0x180   : > { %v576_v21 = vadd.f32 %v1364_v19, %v2218_v53  ;;  %v570_v22 = vpop.f32.mrb[11].mxu0  ;;  %1583 = vmatprep.subr.bf16.mxu1 %v2190_v46 }
 0x181   : > { %v571_v23 = vadd.f32 %v2218_v53, %v570_v22  ;;  %1415 = vmatprep.mubr.f32.mxu1 %v607_v18 }
 0x182   : > { %1416 = vmatmul.mubr.f32.gmra.mrb[8].mxu1 %v608_v20  ;;  %v610_v26 = vmax.f32 %v576_v21, 0.0 }
 0x183   : > { %v609_v24 = vmax.f32 %v571_v23, 0.0  ;;  %v1367_v25 = vpop.f32.mrb[12].mxu0  ;;  %1591 = vmatpush3.bf16.msra.mxu1 %v2190_v46 }
 0x184   : > { %v586_v27 = vadd.f32 %v1367_v25, %v2218_v53  ;;  %v580_v28 = vpop.f32.mrb[13].mxu0  ;;  %1584 = vmatprep.subr.bf16.mxu1 %v2200_v49 }
 0x185   : > { %v581_v29 = vadd.f32 %v2218_v53, %v580_v28  ;;  %1418 = vmatprep.mubr.f32.mxu1 %v609_v24 }
 0x186   : > { %1419 = vmatmul.mubr.f32.gmra.mrb[10].mxu1 %v610_v26  ;;  %v612_v32 = vmax.f32 %v586_v27, 0.0  ;;  %v2256_v26 = vld [vmem:[%s2332_s7] ss:$0 sm:$0xff] }
 0x187   : > { %v611_v30 = vmax.f32 %v581_v29, 0.0  ;;  %v1370_v31 = vpop.f32.mrb[14].mxu0  ;;  %1592 = vmatpush3.bf16.msra.mxu1 %v2200_v49 }
 0x188   : > { %v596_v33 = vadd.f32 %v1370_v31, %v2218_v53  ;;  %v590_v34 = vpop.f32.mrb[15].mxu0  ;;  %1585 = vmatprep.subr.bf16.mxu1 %v2210_v52 }
 0x189   : > { %v591_v35 = vadd.f32 %v2218_v53, %v590_v34  ;;  %1421 = vmatprep.mubr.f32.mxu1 %v611_v30 }
 0x18a   : > { %1422 = vmatmul.mubr.f32.gmra.mrb[12].mxu1 %v612_v32  ;;  %v614_v37 = vmax.f32 %v596_v33, 0.0 }
 0x18b   : > { %v613_v36 = vmax.f32 %v591_v35, 0.0  ;;  %1593 = vmatpush3.bf16.msra.mxu1 %v2210_v52 }
 0x18c   : > { %1586 = vmatprep.subr.bf16.mxu1 %v1575_v40 }
 0x18d   : > { %1424 = vmatprep.mubr.f32.mxu1 %v613_v36 }
 0x18e   : > { %1425 = vmatmul.mubr.f32.gmra.mrb[14].mxu1 %v614_v37 }
 0x18f   : > { %1594 = vmatpush3.bf16.msra.mxu1 %v1575_v40 }
 0x245   : > { %v1405_v42 = vpop.f32.mrb[0].mxu1 }
 0x246   : > { %v710_v43 = vadd.f32 %v1405_v42, %v1197_v41  ;;  %v704_v44 = vpop.f32.mrb[1].mxu1 }
 0x247   : > { %v705_v45 = vadd.f32 %v1197_v41, %v704_v44 }
 0x248   : > { %v784_v48 = vmax.f32 %v710_v43, 0.0 }
 0x249   : > { %v783_v46 = vmax.f32 %v705_v45, 0.0  ;;  %v1408_v47 = vpop.f32.mrb[2].mxu1 }
 0x24a   : > { %v720_v49 = vadd.f32 %v1408_v47, %v1197_v41  ;;  %v714_v50 = vpop.f32.mrb[3].mxu1 }
 0x24b   : > { %v715_v51 = vadd.f32 %v1197_v41, %v714_v50  ;;  %1459 = vmatprep.mubr.f32.mxu0 %v783_v46 }
 0x24c   : > { %1460 = vmatmul.mubr.f32.vlgmr.msra.gmra.mrb[16].mxu0 %v784_v48  ;;  %v786_v54 = vmax.f32 %v720_v49, 0.0 }
 0x24d   : > { %v785_v52 = vmax.f32 %v715_v51, 0.0  ;;  %v1411_v53 = vpop.f32.mrb[4].mxu1 }
 0x24e   : > { %v730_v55 = vadd.f32 %v1411_v53, %v1197_v41  ;;  %v724_v56 = vpop.f32.mrb[5].mxu1 }
 0x24f   : > { %v725_v57 = vadd.f32 %v1197_v41, %v724_v56  ;;  %1462 = vmatprep.mubr.f32.mxu0 %v785_v52 }
 0x250   : > { %1463 = vmatmul.mubr.f32.gmra.mrb[18].mxu0 %v786_v54  ;;  %v788_v60 = vmax.f32 %v730_v55, 0.0 }
 0x251   : > { %v787_v58 = vmax.f32 %v725_v57, 0.0  ;;  %v1414_v59 = vpop.f32.mrb[6].mxu1 }
 0x252   : > { %v740_v61 = vadd.f32 %v1414_v59, %v1197_v41  ;;  %v734_v62 = vpop.f32.mrb[7].mxu1 }
 0x253   : > { %v735_v63 = vadd.f32 %v1197_v41, %v734_v62  ;;  %1465 = vmatprep.mubr.f32.mxu0 %v787_v58 }
 0x254   : > { %1466 = vmatmul.mubr.f32.gmra.mrb[20].mxu0 %v788_v60  ;;  %v790_v2 = vmax.f32 %v740_v61, 0.0 }
 0x255   : > { %v789_v0 = vmax.f32 %v735_v63, 0.0  ;;  %v1417_v1 = vpop.f32.mrb[8].mxu1 }
 0x256   : > { %v750_v3 = vadd.f32 %v1417_v1, %v1197_v41  ;;  %v744_v4 = vpop.f32.mrb[9].mxu1 }
 0x257   : > { %v745_v5 = vadd.f32 %v1197_v41, %v744_v4  ;;  %1468 = vmatprep.mubr.f32.mxu0 %v789_v0 }
 0x258   : > { %1469 = vmatmul.mubr.f32.gmra.mrb[22].mxu0 %v790_v2  ;;  %v792_v8 = vmax.f32 %v750_v3, 0.0 }
 0x259   : > { %v791_v6 = vmax.f32 %v745_v5, 0.0  ;;  %v1420_v7 = vpop.f32.mrb[10].mxu1 }
 0x25a   : > { %v760_v9 = vadd.f32 %v1420_v7, %v1197_v41  ;;  %v754_v10 = vpop.f32.mrb[11].mxu1 }
 0x25b   : > { %v755_v11 = vadd.f32 %v1197_v41, %v754_v10  ;;  %1471 = vmatprep.mubr.f32.mxu1 %v791_v6 }
 0x25c   : > { %1472 = vmatmul.mubr.f32.vlgmr.msra.gmra.mrb[16].mxu1 %v792_v8  ;;  %v794_v14 = vmax.f32 %v760_v9, 0.0 }
 0x25d   : > { %v793_v12 = vmax.f32 %v755_v11, 0.0  ;;  %v1423_v13 = vpop.f32.mrb[12].mxu1 }
 0x25e   : > { %v770_v15 = vadd.f32 %v1423_v13, %v1197_v41  ;;  %v764_v16 = vpop.f32.mrb[13].mxu1 }
 0x25f   : > { %v765_v17 = vadd.f32 %v1197_v41, %v764_v16  ;;  %1474 = vmatprep.mubr.f32.mxu1 %v793_v12 }
 0x260   : > { %1475 = vmatmul.mubr.f32.gmra.mrb[18].mxu1 %v794_v14  ;;  %v796_v20 = vmax.f32 %v770_v15, 0.0 }
 0x261   : > { %v795_v18 = vmax.f32 %v765_v17, 0.0  ;;  %v1426_v19 = vpop.f32.mrb[14].mxu1 }
 0x262   : > { %v780_v21 = vadd.f32 %v1426_v19, %v1197_v41  ;;  %v774_v22 = vpop.f32.mrb[15].mxu1 }
 0x263   : > { %v775_v23 = vadd.f32 %v1197_v41, %v774_v22  ;;  %1477 = vmatprep.mubr.f32.mxu1 %v795_v18 }
 0x264   : > { %1478 = vmatmul.mubr.f32.gmra.mrb[20].mxu1 %v796_v20  ;;  %v798_v25 = vmax.f32 %v780_v21, 0.0 }
 0x265   : > { %v797_v24 = vmax.f32 %v775_v23, 0.0 }
 0x267   : > { %1480 = vmatprep.mubr.f32.mxu1 %v797_v24 }
 0x268   : > { %1481 = vmatmul.mubr.f32.gmra.mrb[22].mxu1 %v798_v25 }
 0x31f   : > { %v1461_v27 = vpop.f32.mrb[16].mxu0 }
 0x320   : > { %v894_v28 = vadd.f32 %v1461_v27, %v2256_v26  ;;  %v888_v29 = vpop.f32.mrb[17].mxu0 }
 0x321   : > { %v889_v30 = vadd.f32 %v2256_v26, %v888_v29 }
 0x322   : > { %v1200_v31 = vmul.f32 -1.442695, %v894_v28 }
 0x323   : > { %v1199_v32 = vmul.f32 -1.442695, %v889_v30  ;;  %v1464_v33 = vpop.f32.mrb[18].mxu0 }
 0x324   : > { %1652 = vpow2.f32 %v1200_v31  ;;  %v904_v34 = vadd.f32 %v1464_v33, %v2256_v26  ;;  %v898_v35 = vpop.f32.mrb[19].mxu0 }
 0x325   : > { %1654 = vpow2.f32 %v1199_v32  ;;  %v899_v36 = vadd.f32 %v2256_v26, %v898_v35 }
 0x326   : > { %v1202_v37 = vmul.f32 -1.442695, %v904_v34 }
 0x327   : > { %v1201_v38 = vmul.f32 -1.442695, %v899_v36  ;;  %v1467_v39 = vpop.f32.mrb[20].mxu0 }
 0x328   : > { %1656 = vpow2.f32 %v1202_v37  ;;  %v914_v40 = vadd.f32 %v1467_v39, %v2256_v26  ;;  %v908_v41 = vpop.f32.mrb[21].mxu0 }
 0x329   : > { %1658 = vpow2.f32 %v1201_v38  ;;  %v909_v42 = vadd.f32 %v2256_v26, %v908_v41 }
 0x32a   : > { %v1204_v43 = vmul.f32 -1.442695, %v914_v40 }
 0x32b   : > { %v1203_v44 = vmul.f32 -1.442695, %v909_v42  ;;  %v1470_v45 = vpop.f32.mrb[22].mxu0 }
 0x32c   : > { %1660 = vpow2.f32 %v1204_v43  ;;  %v924_v46 = vadd.f32 %v1470_v45, %v2256_v26  ;;  %v918_v47 = vpop.f32.mrb[23].mxu0 }
 0x32d   : > { %1662 = vpow2.f32 %v1203_v44  ;;  %v919_v48 = vadd.f32 %v2256_v26, %v918_v47 }
 0x32e   : > { %v1653_v49 = vpop.eup %1652  ;;  %v1206_v50 = vmul.f32 -1.442695, %v924_v46 }
 0x32f   : > { %v1655_v51 = vpop.eup %1654  ;;  %v1016_v52 = vadd.f32 1.0, %v1653_v49  ;;  %v1205_v53 = vmul.f32 -1.442695, %v919_v48  ;;  %v1473_v54 = vpop.f32.mrb[16].mxu1 }
 0x330   : > { %v1015_v55 = vadd.f32 1.0, %v1655_v51  ;;  %1664 = vpow2.f32 %v1206_v50  ;;  %v934_v56 = vadd.f32 %v1473_v54, %v2256_v26  ;;  %v928_v57 = vpop.f32.mrb[17].mxu1 }
 0x331   : > { %1666 = vrcp.f32 %v1016_v52  ;;  %v929_v58 = vadd.f32 %v2256_v26, %v928_v57 }
 0x332   : > { %v1657_v59 = vpop.eup %1656  ;;  %1668 = vrcp.f32 %v1015_v55  ;;  %v1208_v60 = vmul.f32 -1.442695, %v934_v56 }
 0x333   : > { %v1659_v61 = vpop.eup %1658  ;;  %v1018_v62 = vadd.f32 1.0, %v1657_v59  ;;  %1670 = vpow2.f32 %v1205_v53  ;;  %v1207_v63 = vmul.f32 -1.442695, %v929_v58  ;;  %v1476_v0 = vpop.f32.mrb[18].mxu1 }
 0x334   : > { %v1017_v1 = vadd.f32 1.0, %v1659_v61  ;;  %1672 = vpow2.f32 %v1208_v60  ;;  %v944_v2 = vadd.f32 %v1476_v0, %v2256_v26  ;;  %v938_v3 = vpop.f32.mrb[19].mxu1 }
 0x335   : > { %1674 = vrcp.f32 %v1018_v62  ;;  %v939_v4 = vadd.f32 %v2256_v26, %v938_v3 }
 0x336   : > { %v1661_v5 = vpop.eup %1660  ;;  %1676 = vrcp.f32 %v1017_v1  ;;  %v1210_v6 = vmul.f32 -1.442695, %v944_v2 }
 0x337   : > { %v1663_v7 = vpop.eup %1662  ;;  %v1020_v8 = vadd.f32 1.0, %v1661_v5  ;;  %1678 = vpow2.f32 %v1207_v63  ;;  %v1209_v9 = vmul.f32 -1.442695, %v939_v4  ;;  %v1479_v10 = vpop.f32.mrb[20].mxu1 }
 0x338   : > { %v1019_v11 = vadd.f32 1.0, %v1663_v7  ;;  %1680 = vpow2.f32 %v1210_v6  ;;  %v954_v12 = vadd.f32 %v1479_v10, %v2256_v26  ;;  %v948_v13 = vpop.f32.mrb[21].mxu1 }
 0x339   : > { %1682 = vrcp.f32 %v1020_v8  ;;  %v949_v14 = vadd.f32 %v2256_v26, %v948_v13 }
 0x33a   : > { %v1665_v15 = vpop.eup %1664  ;;  %1684 = vrcp.f32 %v1019_v11  ;;  %v1212_v16 = vmul.f32 -1.442695, %v954_v12 }
 0x33b   : > { %v1667_v17 = vpop.eup %1666  ;;  %v1022_v18 = vadd.f32 1.0, %v1665_v15  ;;  %1686 = vpow2.f32 %v1209_v9  ;;  %v1211_v19 = vmul.f32 -1.442695, %v949_v14  ;;  %v1482_v20 = vpop.f32.mrb[22].mxu1 }
 0x33c   : > { %v1669_v21 = vpop.eup %1668  ;;  %1065 = vst.msk [vmem:[%s2275_s24 + $0x8] sm:$0xff] %vm1063_vm0, %v1667_v17  ;;  %1688 = vpow2.f32 %v1212_v16  ;;  %v964_v22 = vadd.f32 %v1482_v20, %v2256_v26  ;;  %v958_v23 = vpop.f32.mrb[23].mxu1 }
 0x33d   : > { %v1671_v24 = vpop.eup %1670  ;;  %1064 = vst.msk [vmem:[%s2275_s24] sm:$0xff] %vm1063_vm0, %v1669_v21  ;;  %1690 = vrcp.f32 %v1022_v18  ;;  %v959_v25 = vadd.f32 %v2256_v26, %v958_v23 }
 0x33e   : > { %v1673_v27 = vpop.eup %1672  ;;  %v1021_v28 = vadd.f32 1.0, %v1671_v24  ;;  %1692 = vpow2.f32 %v1211_v19  ;;  %v1214_v29 = vmul.f32 -1.442695, %v964_v22 }
 0x33f   : > { %v1675_v30 = vpop.eup %1674  ;;  %v1024_v31 = vadd.f32 1.0, %v1673_v27  ;;  %v1213_v32 = vmul.f32 -1.442695, %v959_v25 }
 0x340   : > { %v1677_v33 = vpop.eup %1676  ;;  %1067 = vst.msk [vmem:[%s2275_s24 + $0x18] sm:$0xff] %vm1063_vm0, %v1675_v30  ;;  %1694 = vrcp.f32 %v1021_v28 }
 0x341   : > { %v1679_v34 = vpop.eup %1678  ;;  %1066 = vst.msk [vmem:[%s2275_s24 + $0x10] sm:$0xff] %vm1063_vm0, %v1677_v33  ;;  %1696 = vrcp.f32 %v1024_v31 }
 0x342   : > { %v1681_v35 = vpop.eup %1680  ;;  %v1023_v36 = vadd.f32 1.0, %v1679_v34  ;;  %1698 = vpow2.f32 %v1214_v29 }
 0x343   : > { %v1683_v26 = vpop.eup %1682  ;;  %v1026_v37 = vadd.f32 1.0, %v1681_v35  ;;  %1700 = vpow2.f32 %v1213_v32 }
 0x344   : > { %v1685_v38 = vpop.eup %1684  ;;  %1069 = vst.msk [vmem:[%s2275_s24 + $0x28] sm:$0xff] %vm1063_vm0, %v1683_v26  ;;  %1702 = vrcp.f32 %v1023_v36 }
 0x345   : > { %v1687_v39 = vpop.eup %1686  ;;  %1068 = vst.msk [vmem:[%s2275_s24 + $0x20] sm:$0xff] %vm1063_vm0, %v1685_v38  ;;  %1704 = vrcp.f32 %v1026_v37 }
 0x346   : > { %v1689_v40 = vpop.eup %1688  ;;  %v1025_v41 = vadd.f32 1.0, %v1687_v39 }
 0x347   : > { %v1691_v42 = vpop.eup %1690  ;;  %v1028_v43 = vadd.f32 1.0, %v1689_v40 }
 0x348   : > { %v1693_v44 = vpop.eup %1692  ;;  %1071 = vst.msk [vmem:[%s2275_s24 + $0x38] sm:$0xff] %vm1063_vm0, %v1691_v42  ;;  %1706 = vrcp.f32 %v1025_v41 }
 0x349   : > { %1708 = vrcp.f32 %v1028_v43  ;;  %v1027_v45 = vadd.f32 1.0, %v1693_v44 }
 0x34a   : > { %v1695_v46 = vpop.eup %1694 }
 0x34b   : > { %v1697_v47 = vpop.eup %1696  ;;  %1070 = vst.msk [vmem:[%s2275_s24 + $0x30] sm:$0xff] %vm1063_vm0, %v1695_v46  ;;  %1710 = vrcp.f32 %v1027_v45 }
 0x34c   : > { %v1699_v48 = vpop.eup %1698  ;;  %1073 = vst.msk [vmem:[%s2275_s24 + $0x48] sm:$0xff] %vm1063_vm0, %v1697_v47 }
 0x34d   : > { %v1701_v49 = vpop.eup %1700  ;;  %v1030_v50 = vadd.f32 1.0, %v1699_v48 }
 0x34e   : > { %v1703_v51 = vpop.eup %1702  ;;  %v1029_v52 = vadd.f32 1.0, %v1701_v49 }
 0x34f   : > { %v1705_v53 = vpop.eup %1704  ;;  %1072 = vst.msk [vmem:[%s2275_s24 + $0x40] sm:$0xff] %vm1063_vm0, %v1703_v51  ;;  %1712 = vrcp.f32 %v1030_v50 }
 0x350   : > { %1075 = vst.msk [vmem:[%s2275_s24 + $0x58] sm:$0xff] %vm1063_vm0, %v1705_v53  ;;  %1714 = vrcp.f32 %v1029_v52 }
 0x352   : > { %v1707_v54 = vpop.eup %1706 }
 0x353   : > { %v1709_v55 = vpop.eup %1708  ;;  %1074 = vst.msk [vmem:[%s2275_s24 + $0x50] sm:$0xff] %vm1063_vm0, %v1707_v54 }
 0x354   : > { %1077 = vst.msk [vmem:[%s2275_s24 + $0x68] sm:$0xff] %vm1063_vm0, %v1709_v55 }
 0x355   : > { %v1711_v56 = vpop.eup %1710 }
 0x356   : > { %1076 = vst.msk [vmem:[%s2275_s24 + $0x60] sm:$0xff] %vm1063_vm0, %v1711_v56 }
 0x359   : > { %v1713_v57 = vpop.eup %1712 }
 0x35a   : > { %v1715_v58 = vpop.eup %1714  ;;  %1079 = vst.msk [vmem:[%s2275_s24 + $0x78] sm:$0xff] %vm1063_vm0, %v1713_v57 }
 0x35b   : > { %1078 = vst.msk [vmem:[%s2275_s24 + $0x70] sm:$0xff] %vm1063_vm0, %v1715_v58 }
 0x35c PF: > { %p21_p9 = scmp.ge.s32.totalorder %s1942_s15, 4   ;;  %s2355_s27 = smov %s1838_s28 }
 0x35d   : > { %s2356_s28 = smov %s1842_s29  ;;  %s2357_s29 = smov %s1971_s19 }
 0x35e   : > { %s2358_s30 = smov %s1942_s15  ;;  %23 = sbr.rel (!%p21_p9) target bundleno = 8 (0x8), region = 109 }
 0x365   :  { %1102 = vsyncpa [#allocation3], 1 }
 0x366   :  { %1104 = vsyncpa [#allocation3 + $0x1], 1 }
 0x367   :  { %1105 = vsyncpa [#allocation5], 1 }
 0x368   :  { %1107 = vsyncpa [#allocation5 + $0x1], 1 }

</bundles_post_ra>
